<compile_context>
chip_gen: v5e
topology: v5e:2x2
jax: 0.10.0
libtpu: 0.0.40
codegen_flags: <defaults>
</compile_context>

<pallas_src>
import functools

import jax
import jax.numpy as jnp
from jax.experimental import pallas as pl
from jax.experimental.pallas import tpu as pltpu


def _sampling_loss2_kernel(x_ref, out_ref, acc_ref, *, hw, tile_hw):
    """Accumulates sum over spatial positions of ||x[:, s]||_2 for one batch row."""
    t = pl.program_id(1)
    nt = pl.num_programs(1)

    @pl.when(t == 0)
    def _init():
        acc_ref[...] = jnp.zeros_like(acc_ref)

    x = x_ref[0].astype(jnp.float32)                  # (C, TILE_HW), lane-dense
    sq = jnp.sum(x * x, axis=0, keepdims=True)        # (1, TILE_HW): tiny C-axis reduce
    norms = jnp.sqrt(sq)                              # (1, TILE_HW): lane-dense EUP sqrt

    if hw % tile_hw != 0:
        # Mask the out-of-range tail of the last spatial tile.
        lane = jax.lax.broadcasted_iota(jnp.int32, (1, tile_hw), 1)
        norms = jnp.where(lane < (hw - t * tile_hw), norms, 0.0)

    acc_ref[...] += norms                             # elementwise vreg accumulate

    @pl.when(t == nt - 1)
    def _fin():
        total = jnp.sum(acc_ref[...])                 # one cross-lane reduce per b
        out_ref[...] = jnp.broadcast_to(total, out_ref.shape).astype(out_ref.dtype)


def _pick_tile_hw(hw, c, itemsize):
    """~2 MiB input blocks (x2 double buffering ~ 4 MiB VMEM), lane-aligned."""
    target_bytes = 2 * 1024 * 1024
    max_tile = max(128, ((target_bytes // max(1, c * itemsize)) // 128) * 128)
    if hw <= max_tile:
        return hw      # single full-extent block per batch row (always legal)
    return max_tile    # multiple of 128; tail handled by masking in the kernel


def sampling_loss2(output, target=None, mask=None, *, tile_hw=None):
    """JAX/Pallas equivalent of SamplingLoss2.forward. `target`/`mask` unused."""
    c1 = output["l2_c1"]                              # (B, C, H, W), native NCHW
    B, C, H, W = c1.shape
    hw = H * W
    itemsize = jnp.dtype(c1.dtype).itemsize
    x = c1.reshape(B, C, hw)                          # pure view, no HBM transpose

    if tile_hw is None:
        tile_hw = _pick_tile_hw(hw, C, itemsize)
    nt = pl.cdiv(hw, tile_hw)

    kernel = functools.partial(_sampling_loss2_kernel, hw=hw, tile_hw=tile_hw)
    partials = pl.pallas_call(
        kernel,
        out_shape=jax.ShapeDtypeStruct((B, 8, 128), jnp.float32),
        grid_spec=pltpu.PrefetchScalarGridSpec(
            num_scalar_prefetch=0,
            grid=(B, nt),
            in_specs=[pl.BlockSpec((1, C, tile_hw), lambda b, t: (b, 0, t))],
            out_specs=pl.BlockSpec((1, 8, 128), lambda b, t: (b, 0, 0)),
            scratch_shapes=[pltpu.VMEM((1, tile_hw), jnp.float32)],
        ),
        compiler_params=pltpu.CompilerParams(
            dimension_semantics=("parallel", "arbitrary"),
        ),
        cost_estimate=pl.CostEstimate(
            flops=2 * B * C * hw,
            transcendentals=B * hw,
            bytes_accessed=B * C * hw * itemsize + B * 8 * 128 * 4,
        ),
    )(x)

    # Tiny final combine: mean over B*H*W, then the hinge/threshold logic.
    dist = jnp.sum(partials[:, 0, 0]) / jnp.float32(B * hw)
    return jnp.where(dist <= 1.0, 1.0 - dist, jnp.zeros_like(dist))


def _reference(c1):
    dist = jnp.mean(jnp.sqrt(jnp.sum(c1.astype(jnp.float32) ** 2, axis=1)))
    return jnp.where(dist <= 1.0, 1.0 - dist, 0.0)


if __name__ == "__main__":
    key = jax.random.PRNGKey(0)

    # Case 1: small shape, dist <= 1 branch, single tile per batch row.
    c1 = jax.random.normal(key, (2, 4, 16, 16), dtype=jnp.float32) * 0.3
    loss = jax.block_until_ready(sampling_loss2({"l2_c1": c1}, jnp.zeros_like(c1)))
    ref = _reference(c1)
    assert jnp.allclose(loss, ref, atol=1e-5, rtol=1e-5), (loss, ref)

    # Case 2: spatial size not a multiple of the tile -> exercises tail masking
    # and multi-step accumulation along the reduction axis.
    c1b = jax.random.normal(jax.random.PRNGKey(1), (2, 4, 18, 18), dtype=jnp.float32) * 0.3
    loss_b = jax.block_until_ready(
        sampling_loss2({"l2_c1": c1b}, jnp.zeros_like(c1b), tile_hw=128))
    ref_b = _reference(c1b)
    assert jnp.allclose(loss_b, ref_b, atol=1e-5, rtol=1e-5), (loss_b, ref_b)

    # Case 3: dist > 1 branch -> loss == 0.
    c1c = jax.random.normal(jax.random.PRNGKey(2), (2, 4, 16, 16), dtype=jnp.float32) * 3.0
    loss_c = jax.block_until_ready(sampling_loss2({"l2_c1": c1c}, jnp.zeros_like(c1c)))
    ref_c = _reference(c1c)
    assert jnp.allclose(loss_c, ref_c, atol=1e-5, rtol=1e-5), (loss_c, ref_c)

    print("KERNEL_OK")
</pallas_src>

<mosaic_0001>
module attributes {stable_mosaic.version = 11 : i64} {
  func.func @_sampling_loss2_kernel(%arg0: i32, %arg1: i32, %arg2: memref<1x4x256xf32, #tpu.memory_space<vmem>>, %arg3: memref<1x8x128xf32, #tpu.memory_space<vmem>>, %arg4: memref<1x256xf32, #tpu.memory_space<vmem>>) attributes {dimension_semantics = [#tpu.dimension_semantics<parallel>, #tpu.dimension_semantics<arbitrary>], iteration_bounds = array<i64: 2, 1>, scalar_prefetch = 0 : i64, scratch_operands = 1 : i64, tpu.core_type = #tpu.core_type<tc>, window_params = [{transform_indices = @transform_0, window_bounds = array<i64: 1, 4, 256>}, {transform_indices = @transform_1, window_bounds = array<i64: 1, 8, 128>}]} {
    %c0_i32 = arith.constant 0 : i32
    %0 = arith.cmpi eq, %arg1, %c0_i32 : i32
    %1 = arith.extui %0 : i1 to i32
    %c0_i32_0 = arith.constant 0 : i32
    %2 = arith.cmpi ne, %1, %c0_i32_0 : i32
    scf.if %2 {
      %cst_9 = arith.constant 0.000000e+00 : f32
      %15 = vector.broadcast %cst_9 : f32 to vector<1x256xf32>
      %c0_10 = arith.constant 0 : index
      %c0_11 = arith.constant 0 : index
      %16 = vector.load %arg4[%c0_10, %c0_11] : memref<1x256xf32, #tpu.memory_space<vmem>>, vector<1x256xf32>
      tpu.vector_store %arg4[%c0_10, %c0_11], %15 {strides = array<i32>} : memref<1x256xf32, #tpu.memory_space<vmem>>, vector<1x256xf32>,
    } else {
    }
    %c0 = arith.constant 0 : index
    %c0_1 = arith.constant 0 : index
    %c0_2 = arith.constant 0 : index
    %3 = vector.load %arg2[%c0, %c0_1, %c0_2] : memref<1x4x256xf32, #tpu.memory_space<vmem>>, vector<1x4x256xf32>
    %4 = vector.shape_cast %3 : vector<1x4x256xf32> to vector<4x256xf32>
    %5 = arith.mulf %4, %4 : vector<4x256xf32>
    %cst = arith.constant dense<0.000000e+00> : vector<256xf32>
    %6 = vector.multi_reduction <add>, %5, %cst [0] : vector<4x256xf32> to vector<256xf32>
    %7 = vector.shape_cast %6 : vector<256xf32> to vector<1x256xf32>
    %8 = math.sqrt %7 : vector<1x256xf32>
    %c0_3 = arith.constant 0 : index
    %c0_4 = arith.constant 0 : index
    %9 = vector.load %arg4[%c0_3, %c0_4] : memref<1x256xf32, #tpu.memory_space<vmem>>, vector<1x256xf32>
    %10 = arith.addf %9, %8 : vector<1x256xf32>
    %c0_5 = arith.constant 0 : index
    %c0_6 = arith.constant 0 : index
    %11 = vector.load %arg4[%c0_5, %c0_6] : memref<1x256xf32, #tpu.memory_space<vmem>>, vector<1x256xf32>
    tpu.vector_store %arg4[%c0_5, %c0_6], %10 {strides = array<i32>} : memref<1x256xf32, #tpu.memory_space<vmem>>, vector<1x256xf32>,
    %c0_i32_7 = arith.constant 0 : i32
    %12 = arith.cmpi eq, %arg1, %c0_i32_7 : i32
    %13 = arith.extui %12 : i1 to i32
    %c0_i32_8 = arith.constant 0 : i32
    %14 = arith.cmpi ne, %13, %c0_i32_8 : i32
    scf.if %14 {
      %c0_9 = arith.constant 0 : index
      %c0_10 = arith.constant 0 : index
      %15 = vector.load %arg4[%c0_9, %c0_10] : memref<1x256xf32, #tpu.memory_space<vmem>>, vector<1x256xf32>
      %16 = vector.shape_cast %15 : vector<1x256xf32> to vector<1x1x256xf32>
      %cst_11 = arith.constant dense<0.000000e+00> : vector<1xf32>
      %17 = vector.multi_reduction <add>, %16, %cst_11 [1, 2] : vector<1x1x256xf32> to vector<1xf32>
      %18 = vector.shape_cast %17 : vector<1xf32> to vector<1x1x1xf32>
      %19 = vector.extract %18[0, 0, 0] : f32 from vector<1x1x1xf32>
      %20 = vector.broadcast %19 : f32 to vector<1x8x128xf32>
      %c0_12 = arith.constant 0 : index
      %c0_13 = arith.constant 0 : index
      %c0_14 = arith.constant 0 : index
      %21 = vector.load %arg3[%c0_12, %c0_13, %c0_14] : memref<1x8x128xf32, #tpu.memory_space<vmem>>, vector<1x8x128xf32>
      tpu.vector_store %arg3[%c0_12, %c0_13, %c0_14], %20 {strides = array<i32>} : memref<1x8x128xf32, #tpu.memory_space<vmem>>, vector<1x8x128xf32>,
    } else {
    }
    return
  }
  func.func @transform_0(%arg0: i32, %arg1: i32) -> (i32, i32, i32) {
    %c0_i32 = arith.constant 0 : i32
    %c0_i32_0 = arith.constant 0 : i32
    return %arg0, %c0_i32, %arg1 : i32, i32, i32
  }
  func.func @transform_1(%arg0: i32, %arg1: i32) -> (i32, i32, i32) {
    %c0_i32 = arith.constant 0 : i32
    %c0_i32_0 = arith.constant 0 : i32
    %c0_i32_1 = arith.constant 0 : i32
    return %arg0, %c0_i32, %c0_i32_0 : i32, i32, i32
  }
}

</mosaic_0001>

<bundles_post_ra>
// kernel: tpu_custom_call.1
= control target key start
LH: loop header
LB: loop body
LE: loop exit
PB: predicated region body
PF: predicated region fallthrough
CT: control target
= control target key end

     0   :  { %6 = vsyncpa [#allocation4], 0  ;;  %s682_s0 = inlined_call_operand.hbm [shape: f32[2,4,256], index: 0, kind: input, shape index: {}]   ;;  %s683_s1 = inlined_call_operand.hbm [shape: f32[2,8,128], index: 1, kind: output, shape index: {}]  }
   0x1   :  { %8 = vsyncpa [#allocation4 + $0x1], 0 }
   0x2   :  { %9 = vsyncpa [#allocation5], 0 }
   0x3   :  { %11 = vsyncpa [#allocation5 + $0x1], 0  ;;  %s550_s6 = smov 0   ;;  %s552_s7 = smov 0  }
   0x4   :  { %s554_s8 = smov 0   ;;  %s556_s9 = smov 0  }
   0x5   :  { %s558_s10 = smov 0   ;;  %s560_s11 = smov 0  }
   0x6 LB: > { %s341_s12 = sadd.s32 4294967295, %s537_s11   ;;  %s342_s13 = sadd.s32 4294967294, %s537_s11   ;;  %s537_s11 = sphi %s560_s11, %s17_s11   ;;  %s533_s10 = sphi %s558_s10, %s694_s10   ;;  %s529_s9 = sphi %s556_s9, %s693_s9   ;;  %s525_s8 = sphi %s554_s8, %s692_s8   ;;  %s521_s7 = sphi %s552_s7, %s691_s7   ;;  %s517_s6 = sphi %s550_s6, %s690_s6  }
   0x7   : > { %s29_s14 = sadd.s32 1, %s533_s10  ;;  %s38_s15 = sadd.s32 1, %s525_s8 }
   0x8   : > { %p31_p0 = scmp.ge.s32.totalorder %s29_s14, 2  ;;  %p45_p1 = scmp.ne.s32.totalorder %s525_s8, %s521_s7 }
   0x9   : > { %p46_p2 = scmp.eq.s32.totalorder %s537_s11, 0  ;;  %p51_p3 = scmp.ne.s32.totalorder %s521_s7, %s517_s6 }
   0xa   : > { %s696_s14 = smov (%p31_p0, %s29_s14), 0  ;;  %p52_p5 = scmp.eq.s32.totalorder %s341_s12, 0 }
   0xb   : > { %p591_p4 = por %p46_p2, %p45_p1  ;;  %s33_s17 = ssub.s32 %s533_s10, %s696_s14 }
   0xc   : > { %p75_p6 = scmp.eq.s32.totalorder %s341_s12, 1  ;;  %p36_p7 = scmp.eq.s32.totalorder %s33_s17, 0 }
   0xd   : > { %p597_p8 = por %p52_p5, %p51_p3  ;;  %p81_p10 = scmp.eq.s32.totalorder %s342_s13, 1 }
   0xe   : > { %p601_p9 = por %p75_p6, %p45_p1  ;;  %p344_p12 = scmp.ge.s32.totalorder %s537_s11, 2 }
   0xf   : > { %s606_s20 = scalar_select %p36_p7, %s525_s8, %s38_s15  }
  0x10   : > { %p608_p11 = por %p81_p10, %p51_p3  ;;  %p370_p13 = scmp.lt.s32.totalorder %s537_s11, 2 }
  0x11   : > { %s101_s22 = sand.u32 1, %s525_s8   ;;  %s355_s24 = sshll.u32 %s533_s10, 3 }
  0x12   : > { %s345_s23 = sshll.u32 %s101_s22, 3  ;;  %s112_s27 = scalar_lea.hbm %s682_s0, %s355_s24 }
  0x13   : > { %s105_s28 = scalar_lea.vmem [#allocation3], %s345_s23  ;;  %s114_s30 = sshll.u32 %s112_s27, 4  ;;  %s115_s30 = int_to_ptr.hbm [resolvable:$true] %s114_s30 }
  0x14   : > { %s116_s29 = sshll.u32 %s105_s28, 4  ;;  %p363_p0 = pnand %p370_p13, %p591_p4  ;;  %s117_s29 = int_to_ptr.vmem [resolvable:$true] %s116_s29 }
  0x15   : > { %p348_p1 = scmp.ge.s32.totalorder %s537_s11, 1  ;;  %p121_p2 = scmp.lt.s32.totalorder %s537_s11, 3 }
  0x16   : > { %s102_s2 = scalar_lea.sflag [#allocation4], %s101_s22 }
  0x17   : > { %365 = dma.hbm_to_vmem [thread:$0]  (!%p363_p0), %s115_s30, 128, %s117_s29, %s102_s2  }
  0x18   : > { %p122_p3 = pnand %p348_p1, %p121_p2 }
  0x19   : > { %s624_s3 = sand.u32 (!%p122_p3), 1, %s521_s7  }
  0x1a   : > { %125 = sbr.rel (%p122_p3) target bundleno = 279 (0x117), region = 24  ;;  %s349_s4 = sshll.u32 (!%p122_p3), %s624_s3, 3 }
  0x1b   : > { %s128_s5 = scalar_lea.sflag (!%p122_p3), [#allocation4], %s624_s3  ;;  %s131_s12 = scalar_lea.vmem (!%p122_p3), [#allocation3], %s349_s4 }
  0x1f   : > { %508 = dma.done.wait (%p597_p8), %s128_s5, 128  }
  0x20   : > { %510 = vsyncadd (%p597_p8), %s128_s5, 4294967168  ;;  %v156_v0 = vlaneseq  ;;  %v539_v2 = vmov 0.0   ;;  %v161_v3 = vld [vmem:[%s131_s12] sm:$0xff]  ;;  %vm169_vm1 = vcmask 1043456   ;;  %vm212_vm6 = vcmask 1040384   ;;  %s352_s13 = sshll.u32 %s529_s9, 3 }
  0x21   : > { %v162_v4 = vmul.f32 %v161_v3, %v161_v3  ;;  %s255_s17 = scalar_lea.hbm %s683_s1, %s352_s13  ;;  %s150_s18 = scalar_lea.vmem [#allocation6], %s349_s4 }
  0x22   : > { %vm634_vm0 = vcmp.lt.s32.totalorder %v156_v0, 256  ;;  %s257_s22 = sshll.u32 %s150_s18, 4  ;;  %s259_s23 = sshll.u32 %s255_s17, 4  ;;  %s258_s22 = int_to_ptr.vmem [resolvable:$true] %s257_s22  ;;  %s260_s23 = int_to_ptr.hbm [resolvable:$true] %s259_s23 }
  0x23   : > { %160 = vst.msk [vmem:[#allocation2] sm:$0x3] %vm634_vm0, %v539_v2  ;;  %s245_s25 = scalar_lea.sflag [#allocation5], %s624_s3  ;;  %s469_s26 = sshra.s32 %s260_s23, 4  ;;  %s470_s26 = int_to_ptr.hbm [resolvable:$true] %s469_s26 }
  0x24   : > { %164 = vst [vmem:[#allocation1] ss:$2 sm:$0xff] %v162_v4  ;;  %s471_s27 = scalar_lea.hbm %s470_s26, 8  ;;  %s475_s29 = scalar_lea.hbm %s683_s1, 16 }
  0x25   : > { %p472_p4 = scmp.ne.s32.totalorder %s470_s26, %s471_s27  ;;  %p476_p7 = scmp.lt.s32.totalorder %s470_s26, %s683_s1 }
  0x26   : > { %p477_p8 = scmp.lt.s32.totalorder %s475_s29, %s471_s27 }
  0x27   : > { %p473_p5 = pnand %p472_p4, %p601_p9 }
  0x28   : > { %p478_p10 = por %p477_p8, %p476_p7 }
  0x29   : > { %p474_p6 = pneg %p473_p5 }
  0x2a   : > { %v208_v41 = vld [vmem:[#allocation2] sm:$0x3] }
  0x2b   : > { %v165_v5 = vld.sshfl [vmem:[#allocation1] sm:$0xff pattern:$0x75316420]  ;;  %v166_v6 = vld.sshfl [vmem:[#allocation1 + $0x8] sm:$0xff pattern:$0x75316420]  ;;  %p479_p13 = pnand %p478_p10, %p474_p6 }
  0x2c   : > { %v170_v7 = vsel %vm169_vm1, %v165_v5, 0.0  ;;  %v177_v8 = vsel %vm169_vm1, %v166_v6, 0.0 }
  0x2d   : > { %v171_v9 = vrot.slane %v170_v7, 4  ;;  %v178_v10 = vrot.slane %v177_v8, 4 }
  0x2f   : > { %v172_v11 = vadd.f32 %v171_v9, %v170_v7  ;;  %v179_v12 = vadd.f32 %v178_v10, %v177_v8 }
  0x31   : > { %v173_v13 = vrot.slane %v172_v11, 2  ;;  %v180_v14 = vrot.slane %v179_v12, 2 }
  0x33   : > { %v174_v15 = vadd.f32 %v173_v13, %v172_v11  ;;  %v181_v16 = vadd.f32 %v180_v14, %v179_v12 }
  0x35   : > { %v175_v17 = vrot.slane %v174_v15, 1  ;;  %v182_v18 = vrot.slane %v181_v16, 1 }
  0x37   : > { %v176_v19 = vadd.f32 %v175_v17, %v174_v15  ;;  %v183_v20 = vadd.f32 %v182_v18, %v181_v16 }
  0x39   : > { %421 = vrsqrt.f32 %v176_v19  ;;  %vm191_vm2 = vcmp.eq.f32.partialorder %v176_v19, inf  ;;  %v194_v34 = vand.u32 2147483648, %v176_v19  ;;  %vm203_vm3 = vcmp.eq.f32.partialorder %v183_v20, inf }
  0x3a   : > { %423 = vrsqrt.f32 %v183_v20  ;;  %v206_v35 = vand.u32 2147483648, %v183_v20  ;;  %vm193_vm4 = vcmp.eq.f32.partialorder %v176_v19, 0.0  ;;  %vm205_vm5 = vcmp.eq.f32.partialorder %v183_v20, 0.0 }
  0x3f   : > { %v422_v21 = vpop.eup %421 }
  0x40   : > { %v424_v22 = vpop.eup %423  ;;  %v185_v23 = vmul.f32 %v422_v21, %v176_v19 }
  0x41   : > { %v197_v24 = vmul.f32 %v424_v22, %v183_v20 }
  0x42   : > { %v186_v25 = vmul.f32 %v422_v21, %v185_v23 }
  0x43   : > { %v198_v26 = vmul.f32 %v424_v22, %v197_v24 }
  0x44   : > { %v187_v27 = vmul.f32 0.5, %v186_v25 }
  0x45   : > { %v199_v28 = vmul.f32 0.5, %v198_v26 }
  0x46   : > { %v188_v29 = vsub.f32 1.5, %v187_v27 }
  0x47   : > { %v200_v30 = vsub.f32 1.5, %v199_v28 }
  0x48   : > { %v189_v31 = vmul.f32 %v422_v21, %v188_v29 }
  0x49   : > { %v201_v32 = vmul.f32 %v424_v22, %v200_v30 }
  0x4a   : > { %v190_v33 = vmul.f32 %v189_v31, %v176_v19 }
  0x4b   : > { %v202_v36 = vmul.f32 %v201_v32, %v183_v20 }
  0x4c   : > { %v192_v37 = vsel %vm191_vm2, %v176_v19, %v190_v33 }
  0x4d   : > { %v204_v38 = vsel %vm203_vm3, %v183_v20, %v202_v36  ;;  %v195_v39 = vsel %vm193_vm4, %v194_v34, %v192_v37 }
  0x4e   : > { %v207_v40 = vsel %vm205_vm5, %v206_v35, %v204_v38 }
  0x4f   : > { %v211_v42 = vrot.slane %v207_v40, 7 }
  0x51   : > { %v213_v43 = vsel %vm212_vm6, %v195_v39, %v211_v42 }
  0x52   : > { %v215_v44 = vadd.f32 %v213_v43, %v208_v41 }
  0x54   : > { %220 = vst.msk [vmem:[#allocation2] sm:$0x3] %vm634_vm0, %v215_v44 }
  0x5b   : > { %v224_v45 = vld [vmem:[#allocation2] sm:$0x3] }
  0x5c   : > { %v226_v46 = vperm.slane %v224_v45, 0  ;;  %v227_v47 = vperm.slane %v224_v45, 1 }
  0x5e   : > { %v230_v48 = vsel %vm212_vm6, %v226_v46, 0.0  ;;  %v231_v49 = vsel %vm212_vm6, %v227_v47, 0.0 }
  0x5f   : > { %v232_v50 = vadd.f32 %v231_v49, %v230_v48 }
  0x61   : > { %233 = vadd.xlane.f32.xlu0 %v232_v50 }
  0xd4   : > { %v234_v51 = vpop.xlane.xlu0 %233 }
  0xd5   : > { %v235_v52 = vrot.slane %v234_v51, 4 }
  0xd7   : > { %v236_v53 = vadd.f32 %v235_v52, %v234_v51 }
  0xd9   : > { %v237_v54 = vrot.slane %v236_v53, 2 }
  0xdb   : > { %v238_v55 = vadd.f32 %v237_v54, %v236_v53 }
  0xdd   : > { %v239_v56 = vrot.slane %v238_v55, 1 }
  0xdf   : > { %v240_v57 = vadd.f32 %v239_v56, %v238_v55 }
  0xe1   : > { %356 = vpush %v240_v57 }
 0x112   : > { %s357_s24 = spop %356 }
 0x113   : > { %v242_v58 = vstv %s357_s24 }
 0x114   : > { %243 = vst [vmem:[%s150_s18] sm:$0xff] %v242_v58 }
 0x115   : > { %482 = shalt.err (!%p479_p13)
}
 0x116   : > { %360 = dma.vmem_to_hbm [thread:$0]  (%p601_p9), %s258_s22, 128, %s260_s23, %s245_s25  }
 0x117 PF: > { %s271_s3 = sand.u32 1, %s517_s6   ;;  %p367_p0 = pnand %p344_p12, %p608_p11 }
 0x118   : > { %s272_s4 = scalar_lea.sflag [#allocation5], %s271_s3 }
 0x119   : > { %p368_p1 = pneg %p367_p0 }
 0x11b   : > { %512 = dma.done.wait (%p368_p1), %s272_s4, 128  }
 0x11c   : > { %514 = vsyncadd (%p368_p1), %s272_s4, 4294967168  ;;  %s17_s11 = sadd.s32 1, %s537_s11   ;;  %s690_s6 = smov %s521_s7 }
 0x11d   : > { %p14_p2 = scmp.ge.s32.totalorder %s17_s11, 4   ;;  %s691_s7 = smov %s525_s8 }
 0x11e   : > { %s692_s8 = smov %s606_s20  ;;  %s693_s9 = smov %s533_s10 }
 0x11f   : > { %s694_s10 = smov %s696_s14  ;;  %16 = sbr.rel (!%p14_p2) target bundleno = 6 (0x6), region = 77 }
 0x124   :  { %278 = vsyncpa [#allocation4], 1 }
 0x125   :  { %280 = vsyncpa [#allocation4 + $0x1], 1 }
 0x126   :  { %281 = vsyncpa [#allocation5], 1 }
 0x127   :  { %283 = vsyncpa [#allocation5 + $0x1], 1 }

</bundles_post_ra>
